<compile_context>
chip_gen: v7x
topology: tpu7x:2x2x1
jax: 0.10.0
libtpu: 0.0.40
codegen_flags: <defaults>
</compile_context>

<pallas_src>
import functools
import numpy as np
import jax
import jax.numpy as jnp
from jax.experimental import pallas as pl
from jax.experimental.pallas import tpu as pltpu


NODE_TYPES = ('user', 'artist', 'tag')

# Relations grouped by destination type (output-resident 'sum' aggregation) and,
# within/across groups, ordered so the source type repeats where possible
# (consecutive identical xs block index => Pallas skips the re-DMA).
GROUPED_RELATIONS = (
    ('tag', 'ta', 'artist'),
    ('user', 'ua', 'artist'),
    ('user', 'uu0', 'user'),
    ('user', 'uu1', 'user'),
    ('artist', 'au', 'user'),
    ('artist', 'at', 'tag'),
)

_SRC_T = np.array([NODE_TYPES.index(s) for s, _, _ in GROUPED_RELATIONS], np.int32)
_DST_T = np.array([NODE_TYPES.index(d) for _, _, d in GROUPED_RELATIONS], np.int32)
_FIRST = np.ones(len(GROUPED_RELATIONS), np.int32)
for _i in range(1, len(GROUPED_RELATIONS)):
    if _DST_T[_i] == _DST_T[_i - 1]:
        _FIRST[_i] = 0


# ---------------------------------------------------------------------------
# Fused hetero-GAT layer kernel. Grid = (dst row tiles, relation). Per step:
#   zs   = xs @ W_r                           (MXU, bf16 in / f32 acc)
#   e    = leaky_relu(er[dst] + el[src])      (el/er precomputed with folded weights)
#   p    = masked exp(e - rowmax)             (softmax numerator)
#   agg  = (p_bf16 @ zs_h_bf16) * 1/(p @ 1)   (MXU agg + EUP reciprocal normalize)
#   out[dst_type, tile] += agg                (output-resident accumulator;
#                                              group bias written once at init)
# ---------------------------------------------------------------------------
def _hetero_gat_layer_kernel(src_t_ref, dst_t_ref, first_ref,
                             xs_ref, w_ref, el_ref, er_ref, binit_ref, adj_ref,
                             out_ref, *, num_heads, out_feats, neg_slope):
    r = pl.program_id(1)

    # First relation of a dst-type group: seed the resident accumulator with the
    # group's pre-summed bias (replaces zero-init + per-relation bias adds).
    @pl.when(first_ref[r] == 1)
    def _init():
        out_ref[...] = jnp.broadcast_to(binit_ref[0], out_ref.shape)

    # Source projection: the only large MXU matmul left in the kernel.
    zs = jnp.dot(xs_ref[...], w_ref[0], preferred_element_type=jnp.float32)  # (Ns, H*F)
    zs_bf = zs.astype(jnp.bfloat16)                       # bf16 operand for aggregation

    el = el_ref[0]                                        # (H, Ns)  f32, precomputed
    er = er_ref[0]                                        # (Ndt, H) f32, precomputed
    mask = adj_ref[0] != 0                                # int8 compare, no f32 temp
    ns = mask.shape[1]
    ones_col = jnp.ones((ns, 1), jnp.bfloat16)            # row-sum on the MXU

    for h in range(num_heads):                            # static unroll; H is tiny
        e = er[:, h:h + 1] + el[h:h + 1, :]               # (Ndt, Ns)
        e = jnp.where(e > 0, e, neg_slope * e)            # LeakyReLU(0.2)
        e = jnp.where(mask, e, -1e30)                     # real edges only
        m = jnp.max(e, axis=1, keepdims=True)             # only lane-reduce on XLU
        p = jnp.where(mask, jnp.exp(e - m), 0.0)
        p_bf = p.astype(jnp.bfloat16)
        s = jnp.dot(p_bf, ones_col, preferred_element_type=jnp.float32)   # (Ndt, 1)
        inv = jnp.where(s > 0.0, pl.reciprocal(s, approx=True), 0.0)
        agg = jnp.dot(p_bf, zs_bf[:, h * out_feats:(h + 1) * out_feats],
                      preferred_element_type=jnp.float32)                 # (Ndt, F)
        out_ref[:, h * out_feats:(h + 1) * out_feats] += agg * inv        # per-head write


def _vmem_limit_bytes(n_pad, row_tile, fin, hf, num_heads):
    """Rough scoped-VMEM budget: double-buffered inputs + resident out + temps."""
    dbl = 2 * (n_pad * fin * 2            # xs (bf16)
               + fin * hf * 2             # W_r (bf16)
               + num_heads * n_pad * 4    # el
               + row_tile * num_heads * 4  # er
               + hf * 4                   # group bias
               + row_tile * n_pad)        # adj (int8)
    out = 2 * row_tile * hf * 4
    temps = n_pad * hf * 6 + 4 * row_tile * n_pad * 4 + 2 * row_tile * hf * 4
    est = 2 * (dbl + out + temps)         # 2x headroom
    return int(min(max(est, 32 * 1024 * 1024), 64 * 1024 * 1024))


def hetero_gat_layer(x_all, params, adj_all, *, num_heads, out_feats,
                     row_tile=None, neg_slope=0.2):
    """One HeteroGraphConv(GATConv) layer over all relations in one pallas_call.

    x_all:   (num_types * n_pad, fin) f32, node features stacked in NODE_TYPES order.
    adj_all: (num_rel, n_pad, n_pad) int8, adj[r, d, s] = 1 iff edge s->d (relation
             order = GROUPED_RELATIONS).
    Returns (num_types * n_pad, num_heads * out_feats) f32 (DGL (N, H, F) flattened).
    """
    num_rel, n_pad, _ = adj_all.shape
    num_types = len(NODE_TYPES)
    assert x_all.shape[0] == num_types * n_pad
    fin = x_all.shape[1]
    hf = num_heads * out_feats

    if row_tile is None:
        row_tile = n_pad if n_pad <= 512 else 512
    assert n_pad % row_tile == 0 and (row_tile == n_pad or row_tile % 8 == 0)
    ntiles = n_pad // row_tile

    src_t = jnp.asarray(_SRC_T)
    dst_t = jnp.asarray(_DST_T)
    first = jnp.asarray(_FIRST)

    # Attention reduces precomputed in XLA with the folded weights (tiny (N,H)
    # matmuls): el[r] = x_src @ W_al[r], er[r] = x_dst @ W_ar[r]. This removes the
    # dst projection, both lane-starved selector matmuls, and the xd input/DMA.
    x_by_type = x_all.reshape(num_types, n_pad, fin)
    xs_stack = x_by_type[_SRC_T]                                    # (R, n_pad, fin)
    xd_stack = x_by_type[_DST_T]
    el_all = jnp.einsum('rnf,rfh->rhn', xs_stack, params['w_al'])   # (R, H, n_pad)
    er_all = jnp.einsum('rnf,rfh->rnh', xd_stack, params['w_ar'])   # (R, n_pad, H)

    x_bf = x_all.astype(jnp.bfloat16)

    kernel = functools.partial(_hetero_gat_layer_kernel, num_heads=num_heads,
                               out_feats=out_feats, neg_slope=neg_slope)

    grid_spec = pltpu.PrefetchScalarGridSpec(
        num_scalar_prefetch=3,
        grid=(ntiles, num_rel),                                     # (dst row tile, relation)
        in_specs=[
            pl.BlockSpec((n_pad, fin), lambda i, r, st, dt, ff: (st[r], 0)),          # x[src type]
            pl.BlockSpec((1, fin, hf), lambda i, r, st, dt, ff: (r, 0, 0)),           # W_r (bf16)
            pl.BlockSpec((1, num_heads, n_pad), lambda i, r, st, dt, ff: (r, 0, 0)),  # el_r
            pl.BlockSpec((1, row_tile, num_heads), lambda i, r, st, dt, ff: (r, i, 0)),  # er_r tile
            pl.BlockSpec((1, 1, hf), lambda i, r, st, dt, ff: (r, 0, 0)),             # group bias
            pl.BlockSpec((1, row_tile, n_pad), lambda i, r, st, dt, ff: (r, i, 0)),   # adj_r tile (int8)
        ],
        out_specs=pl.BlockSpec((row_tile, hf),
                               lambda i, r, st, dt, ff: (dt[r] * ntiles + i, 0)),
    )

    # TODO(synk): for v7x at large n_pad, also tile the source (Ns) axis with an
    # online/flash-style softmax so the (row_tile, n_pad) score temporaries and the
    # adjacency block stay bounded; omitted here (toy n_pad fits a single chunk).
    return pl.pallas_call(
        kernel,
        out_shape=jax.ShapeDtypeStruct((num_types * n_pad, hf), jnp.float32),
        grid_spec=grid_spec,
        # Row-tile axis is independent ("parallel", v7x 2-TC sharding); the relation
        # axis must stay sequential ("arbitrary"): consecutive relations with the
        # same dst type accumulate into the resident output block.
        compiler_params=pltpu.CompilerParams(
            dimension_semantics=("parallel", "arbitrary"),
            vmem_limit_bytes=_vmem_limit_bytes(n_pad, row_tile, fin, hf, num_heads)),
    )(src_t, dst_t, first,
      x_bf, params['w'], el_all, er_all, params['b_init'], adj_all)


def u_dot_v(h_src, h_dst, src_idx, dst_idx):
    # HeteroDotPredictor (per-edge u . v). Kept in plain XLA: the gather is already
    # XLA and the reduce is too small to justify a kernel launch.
    return jnp.sum(h_src[src_idx] * h_dst[dst_idx], axis=1, keepdims=True)


# ---------------------------------------------------------------------------
# GAT module (parameters + forward), mirroring the PyTorch module
# ---------------------------------------------------------------------------
def _init_layer_params(key, in_feats, out_feats, num_heads):
    n_rel = len(GROUPED_RELATIONS)
    hf = num_heads * out_feats
    kw, ka, kb = jax.random.split(key, 3)
    w = 0.1 * jax.random.normal(kw, (n_rel, in_feats, hf), jnp.float32)
    al = 0.1 * jax.random.normal(ka, (n_rel, 1, hf), jnp.float32)
    ar = 0.1 * jax.random.normal(kb, (n_rel, 1, hf), jnp.float32)
    b = jnp.zeros((n_rel, 1, hf), jnp.float32)            # DGL inits GATConv bias to 0

    # Fold the per-head attention reduce into the projection weights:
    # W_al[r, f, h] = sum_{c in head h} W[r, f, c] * a_l[r, c]   (likewise W_ar).
    w4 = w.reshape(n_rel, in_feats, num_heads, out_feats)
    w_al = jnp.einsum('rfho,rho->rfh', w4, al.reshape(n_rel, num_heads, out_feats))
    w_ar = jnp.einsum('rfho,rho->rfh', w4, ar.reshape(n_rel, num_heads, out_feats))

    # Per-dst-group summed bias: added once when the resident accumulator of that
    # group is initialized (sum_r (contrib_r + b_r) == sum_r contrib_r + sum_r b_r).
    b_np = np.asarray(b)
    b_init = np.zeros_like(b_np)
    g_start = 0
    for r in range(n_rel):
        if _FIRST[r] == 1:
            g_start = r
        b_init[g_start] += b_np[r]

    return dict(
        w=w.astype(jnp.bfloat16),        # kernel projection weights (MXU, bf16)
        w_al=w_al, w_ar=w_ar,            # folded attention weights (f32, XLA precompute)
        b_init=jnp.asarray(b_init),
    )


class GATPallas:
    def __init__(self, in_feats, hidden_feats, out_feats, num_heads, key, n_pad,
                 row_tile=None):
        self.hidden_feats = hidden_feats
        self.out_feats = out_feats
        self.num_heads = num_heads
        self.n_pad = n_pad
        self.row_tile = row_tile
        k1, k2 = jax.random.split(key)
        self.layer1 = _init_layer_params(k1, in_feats, hidden_feats, num_heads)
        self.layer2 = _init_layer_params(k2, hidden_feats * num_heads, out_feats, 1)

    def forward(self, adj_all, pos_edges, neg_edges, inputs, etype):
        n_pad = self.n_pad
        x_all = jnp.concatenate([inputs[t] for t in NODE_TYPES], axis=0)
        h1 = hetero_gat_layer(x_all, self.layer1, adj_all,
                              num_heads=self.num_heads, out_feats=self.hidden_feats,
                              row_tile=self.row_tile)
        # h1 is already DGL's reshape(-1, hidden*heads) layout -> feed layer 2 directly.
        h2 = hetero_gat_layer(h1, self.layer2, adj_all,
                              num_heads=1, out_feats=self.out_feats,
                              row_tile=self.row_tile)
        # layer 2 has 1 head: torch.mean(v, dim=1) over the head axis is identity.
        h = {t: h2[i * n_pad:(i + 1) * n_pad] for i, t in enumerate(NODE_TYPES)}
        srct, _, dstt = etype
        pos = u_dot_v(h[srct], h[dstt], pos_edges[0], pos_edges[1])
        neg = u_dot_v(h[srct], h[dstt], neg_edges[0], neg_edges[1])
        return pos, neg


if __name__ == "__main__":
    # TODO(synk): LastFM_link.dat / DGL heterograph construction replaced with a
    # deterministic synthetic hetero-graph (dense int8 adjacency masks per relation).
    key = jax.random.PRNGKey(0)
    n_pad = 16                                   # nodes per node type (toy size)
    n_nodes = {t: n_pad for t in NODE_TYPES}
    in_feats, hidden_feats, out_feats, num_heads = 8, 8, 8, 2
    k_neg = 5

    key, *fkeys = jax.random.split(key, 1 + len(NODE_TYPES))
    inputs = {t: jax.random.normal(fk, (n_nodes[t], in_feats), jnp.float32)
              for t, fk in zip(NODE_TYPES, fkeys)}

    adj_np = {}
    for (srct, name, dstt) in GROUPED_RELATIONS:
        key, ak = jax.random.split(key)
        nd, ns = n_nodes[dstt], n_nodes[srct]
        a = np.asarray(jax.random.bernoulli(ak, 0.3, (nd, ns)), dtype=np.int8)
        # guarantee every destination node has at least one in-edge (DGL GATConv
        # errors on zero-in-degree nodes by default)
        a[np.arange(nd), np.arange(nd) % ns] = 1
        adj_np[name] = a
    adj_all = jnp.asarray(
        np.stack([adj_np[name] for (_, name, _) in GROUPED_RELATIONS]), jnp.int8)

    etype = ('artist', 'at', 'tag')
    # positive edges of etype from its adjacency (adj is (n_tag, n_artist))
    dst_nz, src_nz = np.nonzero(adj_np['at'])
    pos_src = jnp.asarray(src_nz, jnp.int32)     # artist ids
    pos_dst = jnp.asarray(dst_nz, jnp.int32)     # tag ids
    n_pos = int(pos_src.shape[0])

    key, nk = jax.random.split(key)
    neg_src = jnp.repeat(pos_src, k_neg)
    neg_dst = jax.random.randint(nk, (n_pos * k_neg,), 0, n_nodes['tag'], jnp.int32)

    key, mk = jax.random.split(key)
    # row_tile=8 exercises the parallel dst-row-tile grid axis (2 tiles per node type).
    model = GATPallas(in_feats, hidden_feats, out_feats, num_heads, mk, n_pad,
                      row_tile=8)
    pos_score, neg_score = model.forward(adj_all, (pos_src, pos_dst),
                                         (neg_src, neg_dst), inputs, etype)
    jax.block_until_ready((pos_score, neg_score))
    assert pos_score.shape == (n_pos, 1)
    assert neg_score.shape == (n_pos * k_neg, 1)
    assert bool(jnp.all(jnp.isfinite(pos_score))) and bool(jnp.all(jnp.isfinite(neg_score)))
    print("KERNEL_OK")
</pallas_src>

<mosaic_0001>
module attributes {stable_mosaic.version = 11 : i64} {
  func.func @_hetero_gat_layer_kernel(%arg0: i32, %arg1: i32, %arg2: memref<6xi32, #tpu.memory_space<smem>>, %arg3: memref<6xi32, #tpu.memory_space<smem>>, %arg4: memref<6xi32, #tpu.memory_space<smem>>, %arg5: memref<16x8xbf16, #tpu.memory_space<vmem>>, %arg6: memref<1x8x16xbf16, #tpu.memory_space<vmem>>, %arg7: memref<1x2x16xf32, #tpu.memory_space<vmem>>, %arg8: memref<1x8x2xf32, #tpu.memory_space<vmem>>, %arg9: memref<1x1x16xf32, #tpu.memory_space<vmem>>, %arg10: memref<1x8x16xi8, #tpu.memory_space<vmem>>, %arg11: memref<8x16xf32, #tpu.memory_space<vmem>>) attributes {dimension_semantics = [#tpu.dimension_semantics<parallel>, #tpu.dimension_semantics<arbitrary>], iteration_bounds = array<i64: 2, 6>, scalar_prefetch = 3 : i64, scratch_operands = 0 : i64, tpu.core_type = #tpu.core_type<tc>, window_params = [{transform_indices = @transform_0, window_bounds = array<i64: 16, 8>}, {transform_indices = @transform_1, window_bounds = array<i64: 1, 8, 16>}, {transform_indices = @transform_2, window_bounds = array<i64: 1, 2, 16>}, {transform_indices = @transform_3, window_bounds = array<i64: 1, 8, 2>}, {transform_indices = @transform_4, window_bounds = array<i64: 1, 1, 16>}, {transform_indices = @transform_5, window_bounds = array<i64: 1, 8, 16>}, {transform_indices = @transform_6, window_bounds = array<i64: 8, 16>}]} {
    %0 = arith.index_cast %arg1 : i32 to index
    %1 = memref.load %arg4[%0] : memref<6xi32, #tpu.memory_space<smem>>
    %c1_i32 = arith.constant 1 : i32
    %2 = arith.cmpi eq, %1, %c1_i32 : i32
    %3 = arith.extui %2 : i1 to i32
    %c0_i32 = arith.constant 0 : i32
    %4 = arith.cmpi ne, %3, %c0_i32 : i32
    scf.if %4 {
      %c0_39 = arith.constant 0 : index
      %c0_40 = arith.constant 0 : index
      %c0_41 = arith.constant 0 : index
      %85 = vector.load %arg9[%c0_39, %c0_40, %c0_41] : memref<1x1x16xf32, #tpu.memory_space<vmem>>, vector<1x1x16xf32>
      %86 = vector.shape_cast %85 : vector<1x1x16xf32> to vector<1x16xf32>
      %87 = vector.shape_cast %86 : vector<1x16xf32> to vector<1x16xf32>
      %88 = vector.broadcast %87 : vector<1x16xf32> to vector<8x16xf32>
      %c0_42 = arith.constant 0 : index
      %c0_43 = arith.constant 0 : index
      %89 = vector.load %arg11[%c0_42, %c0_43] : memref<8x16xf32, #tpu.memory_space<vmem>>, vector<8x16xf32>
      tpu.vector_store %arg11[%c0_42, %c0_43], %88 {strides = array<i32>} : memref<8x16xf32, #tpu.memory_space<vmem>>, vector<8x16xf32>,
    } else {
    }
    %c0 = arith.constant 0 : index
    %c0_0 = arith.constant 0 : index
    %5 = vector.load %arg5[%c0, %c0_0] : memref<16x8xbf16, #tpu.memory_space<vmem>>, vector<16x8xbf16>
    %c0_1 = arith.constant 0 : index
    %c0_2 = arith.constant 0 : index
    %c0_3 = arith.constant 0 : index
    %6 = vector.load %arg6[%c0_1, %c0_2, %c0_3] : memref<1x8x16xbf16, #tpu.memory_space<vmem>>, vector<1x8x16xbf16>
    %7 = vector.shape_cast %6 : vector<1x8x16xbf16> to vector<8x16xbf16>
    %cst = arith.constant dense<0.000000e+00> : vector<16x16xf32>
    %8 = tpu.matmul %5, %7, %cst {dimension_numbers = #tpu.dot_dimension_numbers<[1], [0], [0], [1], [0, 0, 1, 1], [], []>} : vector<16x8xbf16>, vector<8x16xbf16>, vector<16x16xf32> -> vector<16x16xf32>
    %9 = arith.truncf %8 : vector<16x16xf32> to vector<16x16xbf16>
    %c0_4 = arith.constant 0 : index
    %c0_5 = arith.constant 0 : index
    %c0_6 = arith.constant 0 : index
    %10 = vector.load %arg7[%c0_4, %c0_5, %c0_6] : memref<1x2x16xf32, #tpu.memory_space<vmem>>, vector<1x2x16xf32>
    %11 = vector.shape_cast %10 : vector<1x2x16xf32> to vector<2x16xf32>
    %c0_7 = arith.constant 0 : index
    %c0_8 = arith.constant 0 : index
    %c0_9 = arith.constant 0 : index
    %12 = vector.load %arg8[%c0_7, %c0_8, %c0_9] : memref<1x8x2xf32, #tpu.memory_space<vmem>>, vector<1x8x2xf32>
    %13 = vector.shape_cast %12 : vector<1x8x2xf32> to vector<8x2xf32>
    %c0_10 = arith.constant 0 : index
    %c0_11 = arith.constant 0 : index
    %c0_12 = arith.constant 0 : index
    %14 = vector.load %arg10[%c0_10, %c0_11, %c0_12] : memref<1x8x16xi8, #tpu.memory_space<vmem>>, vector<1x8x16xi8>
    %15 = vector.shape_cast %14 : vector<1x8x16xi8> to vector<8x16xi8>
    %c0_i8 = arith.constant 0 : i8
    %16 = vector.broadcast %c0_i8 : i8 to vector<8x16xi8>
    %17 = arith.cmpi ne, %15, %16 : vector<8x16xi8>
    %cst_13 = arith.constant 1.000000e+00 : bf16
    %18 = vector.broadcast %cst_13 : bf16 to vector<16x1xbf16>
    %19 = vector.extract_strided_slice %13 {offsets = [0, 0], sizes = [8, 1], strides = [1, 1]} : vector<8x2xf32> to vector<8x1xf32>
    %20 = vector.extract_strided_slice %11 {offsets = [0, 0], sizes = [1, 16], strides = [1, 1]} : vector<2x16xf32> to vector<1x16xf32>
    %21 = vector.broadcast %19 : vector<8x1xf32> to vector<8x16xf32>
    %22 = vector.broadcast %20 : vector<1x16xf32> to vector<8x16xf32>
    %23 = arith.addf %21, %22 : vector<8x16xf32>
    %cst_14 = arith.constant 0.000000e+00 : f32
    %24 = vector.broadcast %cst_14 : f32 to vector<8x16xf32>
    %25 = arith.cmpf ogt, %23, %24 : vector<8x16xf32>
    %cst_15 = arith.constant 2.000000e-01 : f32
    %26 = vector.broadcast %cst_15 : f32 to vector<8x16xf32>
    %27 = arith.mulf %26, %23 : vector<8x16xf32>
    %28 = arith.select %25, %23, %27 : vector<8x16xi1>, vector<8x16xf32>
    %cst_16 = arith.constant -1.000000e+30 : f32
    %29 = vector.broadcast %cst_16 : f32 to vector<8x16xf32>
    %30 = arith.select %17, %28, %29 : vector<8x16xi1>, vector<8x16xf32>
    %cst_17 = arith.constant dense<0xFF800000> : vector<8xf32>
    %31 = vector.multi_reduction <maximumf>, %30, %cst_17 [1] : vector<8x16xf32> to vector<8xf32>
    %32 = vector.shape_cast %31 : vector<8xf32> to vector<8x1xf32>
    %33 = vector.broadcast %32 : vector<8x1xf32> to vector<8x16xf32>
    %34 = arith.subf %30, %33 : vector<8x16xf32>
    %35 = math.exp %34 : vector<8x16xf32>
    %cst_18 = arith.constant 0.000000e+00 : f32
    %36 = vector.broadcast %cst_18 : f32 to vector<8x16xf32>
    %37 = arith.select %17, %35, %36 : vector<8x16xi1>, vector<8x16xf32>
    %38 = arith.truncf %37 : vector<8x16xf32> to vector<8x16xbf16>
    %cst_19 = arith.constant dense<0.000000e+00> : vector<8x1xf32>
    %39 = tpu.matmul %38, %18, %cst_19 {dimension_numbers = #tpu.dot_dimension_numbers<[1], [0], [0], [1], [0, 0, 1, 1], [], []>} : vector<8x16xbf16>, vector<16x1xbf16>, vector<8x1xf32> -> vector<8x1xf32>
    %cst_20 = arith.constant 0.000000e+00 : f32
    %40 = vector.broadcast %cst_20 : f32 to vector<8x1xf32>
    %41 = arith.cmpf ogt, %39, %40 : vector<8x1xf32>
    %42 = tpu.reciprocal %39 {approx = true} : vector<8x1xf32> -> vector<8x1xf32>
    %cst_21 = arith.constant 0.000000e+00 : f32
    %43 = vector.broadcast %cst_21 : f32 to vector<8x1xf32>
    %44 = arith.select %41, %42, %43 : vector<8x1xi1>, vector<8x1xf32>
    %45 = vector.extract_strided_slice %9 {offsets = [0, 0], sizes = [16, 8], strides = [1, 1]} : vector<16x16xbf16> to vector<16x8xbf16>
    %cst_22 = arith.constant dense<0.000000e+00> : vector<8x8xf32>
    %46 = tpu.matmul %38, %45, %cst_22 {dimension_numbers = #tpu.dot_dimension_numbers<[1], [0], [0], [1], [0, 0, 1, 1], [], []>} : vector<8x16xbf16>, vector<16x8xbf16>, vector<8x8xf32> -> vector<8x8xf32>
    %c0_23 = arith.constant 0 : index
    %c0_24 = arith.constant 0 : index
    %47 = vector.load %arg11[%c0_23, %c0_24] : memref<8x16xf32, #tpu.memory_space<vmem>>, vector<8x8xf32>
    %48 = vector.broadcast %44 : vector<8x1xf32> to vector<8x8xf32>
    %49 = arith.mulf %46, %48 : vector<8x8xf32>
    %50 = arith.addf %47, %49 : vector<8x8xf32>
    %c0_25 = arith.constant 0 : index
    %c0_26 = arith.constant 0 : index
    %51 = vector.load %arg11[%c0_25, %c0_26] : memref<8x16xf32, #tpu.memory_space<vmem>>, vector<8x8xf32>
    tpu.vector_store %arg11[%c0_25, %c0_26], %50 {strides = array<i32>} : memref<8x16xf32, #tpu.memory_space<vmem>>, vector<8x8xf32>,
    %52 = vector.extract_strided_slice %13 {offsets = [0, 1], sizes = [8, 1], strides = [1, 1]} : vector<8x2xf32> to vector<8x1xf32>
    %53 = vector.extract_strided_slice %11 {offsets = [1, 0], sizes = [1, 16], strides = [1, 1]} : vector<2x16xf32> to vector<1x16xf32>
    %54 = vector.broadcast %52 : vector<8x1xf32> to vector<8x16xf32>
    %55 = vector.broadcast %53 : vector<1x16xf32> to vector<8x16xf32>
    %56 = arith.addf %54, %55 : vector<8x16xf32>
    %cst_27 = arith.constant 0.000000e+00 : f32
    %57 = vector.broadcast %cst_27 : f32 to vector<8x16xf32>
    %58 = arith.cmpf ogt, %56, %57 : vector<8x16xf32>
    %cst_28 = arith.constant 2.000000e-01 : f32
    %59 = vector.broadcast %cst_28 : f32 to vector<8x16xf32>
    %60 = arith.mulf %59, %56 : vector<8x16xf32>
    %61 = arith.select %58, %56, %60 : vector<8x16xi1>, vector<8x16xf32>
    %cst_29 = arith.constant -1.000000e+30 : f32
    %62 = vector.broadcast %cst_29 : f32 to vector<8x16xf32>
    %63 = arith.select %17, %61, %62 : vector<8x16xi1>, vector<8x16xf32>
    %cst_30 = arith.constant dense<0xFF800000> : vector<8xf32>
    %64 = vector.multi_reduction <maximumf>, %63, %cst_30 [1] : vector<8x16xf32> to vector<8xf32>
    %65 = vector.shape_cast %64 : vector<8xf32> to vector<8x1xf32>
    %66 = vector.broadcast %65 : vector<8x1xf32> to vector<8x16xf32>
    %67 = arith.subf %63, %66 : vector<8x16xf32>
    %68 = math.exp %67 : vector<8x16xf32>
    %cst_31 = arith.constant 0.000000e+00 : f32
    %69 = vector.broadcast %cst_31 : f32 to vector<8x16xf32>
    %70 = arith.select %17, %68, %69 : vector<8x16xi1>, vector<8x16xf32>
    %71 = arith.truncf %70 : vector<8x16xf32> to vector<8x16xbf16>
    %cst_32 = arith.constant dense<0.000000e+00> : vector<8x1xf32>
    %72 = tpu.matmul %71, %18, %cst_32 {dimension_numbers = #tpu.dot_dimension_numbers<[1], [0], [0], [1], [0, 0, 1, 1], [], []>} : vector<8x16xbf16>, vector<16x1xbf16>, vector<8x1xf32> -> vector<8x1xf32>
    %cst_33 = arith.constant 0.000000e+00 : f32
    %73 = vector.broadcast %cst_33 : f32 to vector<8x1xf32>
    %74 = arith.cmpf ogt, %72, %73 : vector<8x1xf32>
    %75 = tpu.reciprocal %72 {approx = true} : vector<8x1xf32> -> vector<8x1xf32>
    %cst_34 = arith.constant 0.000000e+00 : f32
    %76 = vector.broadcast %cst_34 : f32 to vector<8x1xf32>
    %77 = arith.select %74, %75, %76 : vector<8x1xi1>, vector<8x1xf32>
    %78 = vector.extract_strided_slice %9 {offsets = [0, 8], sizes = [16, 8], strides = [1, 1]} : vector<16x16xbf16> to vector<16x8xbf16>
    %cst_35 = arith.constant dense<0.000000e+00> : vector<8x8xf32>
    %79 = tpu.matmul %71, %78, %cst_35 {dimension_numbers = #tpu.dot_dimension_numbers<[1], [0], [0], [1], [0, 0, 1, 1], [], []>} : vector<8x16xbf16>, vector<16x8xbf16>, vector<8x8xf32> -> vector<8x8xf32>
    %c0_36 = arith.constant 0 : index
    %c8 = arith.constant 8 : index
    %80 = vector.load %arg11[%c0_36, %c8] : memref<8x16xf32, #tpu.memory_space<vmem>>, vector<8x8xf32>
    %81 = vector.broadcast %77 : vector<8x1xf32> to vector<8x8xf32>
    %82 = arith.mulf %79, %81 : vector<8x8xf32>
    %83 = arith.addf %80, %82 : vector<8x8xf32>
    %c0_37 = arith.constant 0 : index
    %c8_38 = arith.constant 8 : index
    %84 = vector.load %arg11[%c0_37, %c8_38] : memref<8x16xf32, #tpu.memory_space<vmem>>, vector<8x8xf32>
    tpu.vector_store %arg11[%c0_37, %c8_38], %83 {strides = array<i32>} : memref<8x16xf32, #tpu.memory_space<vmem>>, vector<8x8xf32>,
    return
  }
  func.func @transform_0(%arg0: i32, %arg1: i32, %arg2: memref<6xi32, #tpu.memory_space<smem>>, %arg3: memref<6xi32, #tpu.memory_space<smem>>, %arg4: memref<6xi32, #tpu.memory_space<smem>>) -> (i32, i32) {
    %0 = arith.index_cast %arg1 : i32 to index
    %1 = memref.load %arg2[%0] : memref<6xi32, #tpu.memory_space<smem>>
    %c0_i32 = arith.constant 0 : i32
    %c0_i32_0 = arith.constant 0 : i32
    return %1, %c0_i32 : i32, i32
  }
  func.func @transform_1(%arg0: i32, %arg1: i32, %arg2: memref<6xi32, #tpu.memory_space<smem>>, %arg3: memref<6xi32, #tpu.memory_space<smem>>, %arg4: memref<6xi32, #tpu.memory_space<smem>>) -> (i32, i32, i32) {
    %c0_i32 = arith.constant 0 : i32
    %c0_i32_0 = arith.constant 0 : i32
    %c0_i32_1 = arith.constant 0 : i32
    return %arg1, %c0_i32, %c0_i32_0 : i32, i32, i32
  }
  func.func @transform_2(%arg0: i32, %arg1: i32, %arg2: memref<6xi32, #tpu.memory_space<smem>>, %arg3: memref<6xi32, #tpu.memory_space<smem>>, %arg4: memref<6xi32, #tpu.memory_space<smem>>) -> (i32, i32, i32) {
    %c0_i32 = arith.constant 0 : i32
    %c0_i32_0 = arith.constant 0 : i32
    %c0_i32_1 = arith.constant 0 : i32
    return %arg1, %c0_i32, %c0_i32_0 : i32, i32, i32
  }
  func.func @transform_3(%arg0: i32, %arg1: i32, %arg2: memref<6xi32, #tpu.memory_space<smem>>, %arg3: memref<6xi32, #tpu.memory_space<smem>>, %arg4: memref<6xi32, #tpu.memory_space<smem>>) -> (i32, i32, i32) {
    %c0_i32 = arith.constant 0 : i32
    %c0_i32_0 = arith.constant 0 : i32
    return %arg1, %arg0, %c0_i32 : i32, i32, i32
  }
  func.func @transform_4(%arg0: i32, %arg1: i32, %arg2: memref<6xi32, #tpu.memory_space<smem>>, %arg3: memref<6xi32, #tpu.memory_space<smem>>, %arg4: memref<6xi32, #tpu.memory_space<smem>>) -> (i32, i32, i32) {
    %c0_i32 = arith.constant 0 : i32
    %c0_i32_0 = arith.constant 0 : i32
    %c0_i32_1 = arith.constant 0 : i32
    return %arg1, %c0_i32, %c0_i32_0 : i32, i32, i32
  }
  func.func @transform_5(%arg0: i32, %arg1: i32, %arg2: memref<6xi32, #tpu.memory_space<smem>>, %arg3: memref<6xi32, #tpu.memory_space<smem>>, %arg4: memref<6xi32, #tpu.memory_space<smem>>) -> (i32, i32, i32) {
    %c0_i32 = arith.constant 0 : i32
    %c0_i32_0 = arith.constant 0 : i32
    return %arg1, %arg0, %c0_i32 : i32, i32, i32
  }
  func.func @transform_6(%arg0: i32, %arg1: i32, %arg2: memref<6xi32, #tpu.memory_space<smem>>, %arg3: memref<6xi32, #tpu.memory_space<smem>>, %arg4: memref<6xi32, #tpu.memory_space<smem>>) -> (i32, i32) {
    %0 = arith.index_cast %arg1 : i32 to index
    %1 = memref.load %arg3[%0] : memref<6xi32, #tpu.memory_space<smem>>
    %c2_i32 = arith.constant 2 : i32
    %2 = arith.muli %1, %c2_i32 : i32
    %3 = arith.addi %2, %arg0 : i32
    %c0_i32 = arith.constant 0 : i32
    %c0_i32_0 = arith.constant 0 : i32
    return %3, %c0_i32 : i32, i32
  }
}

</mosaic_0001>

<bundles_post_ra>
// kernel: tpu_custom_call.1
= control target key start
LH: loop header
LB: loop body
LE: loop exit
PB: predicated region body
PF: predicated region fallthrough
CT: control target
= control target key end

     0   :  { %s1287_s0 = inlined_call_operand.vmem [shape: s32[6], index: 0, kind: input, shape index: {}]   ;;  %s1288_s3 = inlined_call_operand.vmem [shape: bf16[48,8], index: 3, kind: input, shape index: {}]   ;;  %s1289_s4 = inlined_call_operand.vmem [shape: bf16[6,8,16], index: 4, kind: input, shape index: {}]   ;;  %s1290_s5 = inlined_call_operand.vmem [shape: f32[6,2,16], index: 5, kind: input, shape index: {}]   ;;  %s1291_s6 = inlined_call_operand.vmem [shape: f32[6,16,2], index: 6, kind: input, shape index: {}]   ;;  %s1292_s7 = inlined_call_operand.vmem [shape: f32[6,1,16], index: 7, kind: input, shape index: {}]   ;;  %s1293_s8 = inlined_call_operand.vmem [shape: s8[6,16,16], index: 8, kind: input, shape index: {}]   ;;  %s1294_s9 = inlined_call_operand.vmem [shape: f32[48,16], index: 9, kind: output, shape index: {}]   ;;  %s1295_s1 = inlined_call_operand.vmem [shape: s32[6], index: 1, kind: input, shape index: {}]   ;;  %s1296_s2 = inlined_call_operand.vmem [shape: s32[6], index: 2, kind: input, shape index: {}]  }
   0x1   :  { %1299 = sst [smem:[#allocation11_spill]] %s1289_s4  ;;  %s14_s11 = sshll.u32 %s1287_s0, 4  ;;  %s15_s11 = int_to_ptr.vmem [resolvable:$true] %s14_s11 }
   0x2   :  { %1300 = sst [smem:[#allocation12_spill]] %s1290_s5  ;;  %s18_s14 = sshll.u32 %s1295_s1, 4  ;;  %s19_s14 = int_to_ptr.vmem [resolvable:$true] %s18_s14 }
   0x3   :  { %s1011_s15 = scalar_lea.vmem %s15_s11, 16  ;;  %p1016_p1 = scmp.lt.s32.totalorder %s15_s11, %s15_s11 }
   0x4   :  { %p1012_p0 = scmp.ne.s32.totalorder %s15_s11, %s1011_s15  ;;  %p1017_p2 = scmp.lt.s32.totalorder %s1011_s15, %s1011_s15 }
   0x6   :  { %p1018_p3 = por %p1017_p2, %p1016_p1 }
   0x8   :  { %p1019_p4 = pnand %p1018_p3, %p1012_p0 }
   0xa   :  { %1022 = shalt.err (!%p1019_p4)  }
   0xb   :  { %s1089_s16 = smov [#allocation3]   ;;  %s1023_s17 = scalar_lea.vmem %s19_s14, 16 }
   0xc   :  { %17 = dma.vmem_to_smem %s15_s11, 16, %s1089_s16, [#allocation2] }
   0xd   :  { %p1024_p5 = scmp.ne.s32.totalorder %s19_s14, %s1023_s17  ;;  %p1028_p6 = scmp.lt.s32.totalorder %s19_s14, %s19_s14 }
   0xe   :  { %p1029_p7 = scmp.lt.s32.totalorder %s1023_s17, %s1023_s17 }
  0x10   :  { %p1030_p8 = por %p1029_p7, %p1028_p6 }
  0x12   :  { %p1031_p9 = pnand %p1030_p8, %p1024_p5 }
  0x14   :  { %1034 = shalt.err (!%p1031_p9)  }
  0x15   :  { %s1090_s0 = smov [#allocation4]   ;;  %s22_s19 = sshll.u32 %s1296_s2, 4  ;;  %s23_s19 = int_to_ptr.vmem [resolvable:$true] %s22_s19 }
  0x16   :  { %21 = dma.vmem_to_smem %s19_s14, 16, %s1090_s0, [#allocation2] }
  0x17   :  { %s1035_s20 = scalar_lea.vmem %s23_s19, 16  ;;  %p1040_p11 = scmp.lt.s32.totalorder %s23_s19, %s23_s19 }
  0x18   :  { %p1036_p10 = scmp.ne.s32.totalorder %s23_s19, %s1035_s20  ;;  %p1041_p12 = scmp.lt.s32.totalorder %s1035_s20, %s1035_s20 }
  0x1a   :  { %p1042_p13 = por %p1041_p12, %p1040_p11 }
  0x1c   :  { %p1043_p0 = pnand %p1042_p13, %p1036_p10 }
  0x1e   :  { %1046 = shalt.err (!%p1043_p0)  }
  0x1f   :  { %s1091_s21 = smov [#allocation5]  }
  0x20   :  { %25 = dma.vmem_to_smem %s23_s19, 16, %s1091_s21, [#allocation2] }
  0x21   :  { %1067 = dma.done.wait [#allocation2], 48 }
  0x22   :  { %1068 = vsyncadd [#allocation2], 4294967248 }
  0x23   :  { %27 = sfence }
  0x24   :  { %s1158_s22 = smov 0   ;;  %s1160_s23 = smov 0  }
  0x25   :  { %s1162_s24 = smov 0   ;;  %s1164_s2 = smov 0  }
  0x26   :  { %s1166_s25 = smov 0  }
  0x27 LB: > { %1301 = sst [smem:[#allocation7_spill]] %s1079_s24  ;;  %s42_s26 = sadd.s32 1, %s1079_s24  ;;  %s1087_s25 = sphi %s1166_s25, %s33_s25   ;;  %s1083_s2 = sphi %s1164_s2, %s1312_s2   ;;  %s1079_s24 = sphi %s1162_s24, %s1311_s24   ;;  %s1075_s23 = sphi %s1160_s23, %s1310_s23   ;;  %s1071_s22 = sphi %s1158_s22, %s1309_s22  }
  0x28   : > { %1302 = sst [smem:[#allocation8_spill]] %s1083_s2  ;;  %s45_s27 = sadd.s32 1, %s1083_s2 }
  0x29   : > { %p43_p1 = scmp.ge.s32.totalorder %s42_s26, 6  ;;  %p888_p2 = scmp.ge.s32.totalorder %s1087_s25, 1 }
  0x2a   : > { %p308_p3 = scmp.lt.s32.totalorder %s1087_s25, 13 }
  0x2b   : > { %s1314_s26 = smov (%p43_p1, %s42_s26), 0  ;;  %s1316_s27 = smov (!%p43_p1, %s45_s27), %s1083_s2 }
  0x2c   : > { %1303 = sst [smem:[#allocation9_spill]] %s1314_s26  ;;  %p309_p4 = pnand %p888_p2, %p308_p3 }
  0x2d   : > { %p47_p5 = scmp.ge.s32.totalorder %s1316_s27, 2  ;;  %s368_s28 = sld [smem:[#allocation3 + %s1071_s22]] (!%p309_p4) }
  0x2e   : > { %312 = sbr.rel (%p309_p4) target bundleno = 854 (0x356), region = 44  ;;  %p376_p6 = scmp.lt.s32.totalorder (!%p309_p4), %s1071_s22, 5 }
  0x2f   : > { %s1318_s27 = smov (%p47_p5, %s1316_s27), 0  ;;  %p386_p7 = scmp.lt.s32.totalorder (!%p309_p4), %s1075_s23, 1 }
  0x30   : > { %1304 = sst [smem:[#allocation10_spill]] %s1318_s27  ;;  %s1305_s4 = sld [smem:[#allocation11_spill]] (!%p309_p4) }
  0x31   : > { %s403_s29 = sld [smem:[#allocation4 + %s1071_s22]] (!%p309_p4) }
  0x32   : > { %s1306_s5 = sld [smem:[#allocation12_spill]] (!%p309_p4) }
  0x33   : > { %s889_s1 = sshll.u32 (!%p309_p4), %s368_s28, 1 }
  0x34   : > { %p370_p8 = scmp.lt.s32.totalorder (!%p309_p4), %s889_s1, 5 }
  0x35   : > { %s377_s30 = scalar_select %p376_p6, %s1071_s22, 5 }
  0x36   : > { %s387_s10 = scalar_select %p386_p7, %s1075_s23, 1 }
  0x37   : > { %s891_s11 = sshll.u32 %s377_s30, 2  ;;  %s892_s12 = sshll.u32 %s377_s30, 1 }
  0x38   : > { %s1201_s15 = scalar_lea.vmem %s1305_s4, %s891_s11  ;;  %s1206_s0 = scalar_lea.vmem %s1306_s5, %s892_s12 }
  0x39   : > { %s389_s18 = sadd.s32 %s892_s12, %s387_s10  ;;  %s394_s13 = scalar_lea.vmem %s1292_s7, %s377_s30 }
  0x3a   : > { %s894_s19 = sshll.u32 %s389_s18, 3  ;;  %s1320_s1 = smov (!%p370_p8, %s889_s1), 5 }
  0x3b   : > { %s391_s27 = scalar_lea.vmem %s1291_s6, %s894_s19  ;;  %s896_s11 = sshll.u32 %s389_s18, 1 }
  0x3c   : > { %s897_s14 = sshll.u32 %s403_s29, 1  ;;  %s890_s4 = sshll.u32 %s1320_s1, 2 }
  0x3d   : > { %s1217_s5 = scalar_lea.vmem %s1293_s8, %s896_s11  ;;  %s373_s12 = scalar_lea.vmem %s1288_s3, %s890_s4 }
  0x3e   : > { %s405_s24 = sadd.s32 %s1075_s23, %s897_s14  ;;  %s417_s19 = sld [smem:[#allocation5 + %s1071_s22]] }
  0x3f   : > { %p406_p9 = scmp.lt.s32.totalorder %s405_s24, 5 }
  0x41   : > { %s1322_s24 = smov (!%p406_p9, %s405_s24), 5 }
  0x42   : > { %s898_s20 = sshll.u32 %s1322_s24, 3 }
  0x43   : > { %s1227_s30 = scalar_lea.vmem %s1294_s9, %s898_s20 }
  0x44   : > { %p899_p10 = scmp.ne.s32.totalorder %s417_s19, 1 }
  0x45   : > { %v900_v0 = vld [vmem:[%s394_s13] ss:$0 sm:$0xff] (!%p899_p10)  ;;  %vm429_vm0 = vcmask (!%p899_p10), 130048  }
  0x46   : > { %421 = sbr.rel (%p899_p10) target bundleno = 77 (0x4d), region = 48  ;;  %430 = vst.msk [vmem:[%s1227_s30] sm:$0xff] (!%p899_p10), %vm429_vm0, %v900_v0 }
  0x4d PF: > { %v490_v1 = vld [vmem:[%s391_s27] sm:$0xff]  ;;  %vm443_vm1 = vcmask 1043456   ;;  %v1092_v2 = vmov 0   ;;  %v1093_v3 = vmov 0.0   ;;  %vm1094_vm2 = vmmov 0   ;;  %s1097_s4 = smov 120  }
  0x4e   : > { %999 = vset.pattern.permute.xlu0 %v1092_v2  ;;  %919 = vmatprep.subr.bf16.mxu0 %v1093_v3  ;;  %v433_v4 = vld [vmem:[%s1201_s15] sm:$0xf]  ;;  %vm439_vm3 = vcmask 64512   ;;  %v1095_v7 = vmov 1   ;;  %v498_v8 = vlaneseq  ;;  %vm510_vm7 = vcmask 130048  }
  0x4f   : > { %495 = vperm.xlu0 %999, %v490_v1   ;;  %v445_v5 = vsel %vm443_vm1, %v433_v4, 0  ;;  %921 = vmatprep.mubr.msk.bf16.mxu0 %vm1094_vm2, %v1093_v3  ;;  %v1002_v6 = vld [vmem:[%s373_s12] sm:$0xff]   ;;  %v1096_v31 = vmov 1065369472   ;;  %vm737_vm11 = vcmask 130112  }
  0x50   : > { %920 = vmatpush3.bf16.msra.mxu0 %v445_v5  ;;  %925 = vmatprep.subr.bf16.mxu1 %v1093_v3  ;;  %v499_v9 = vshrl.u32 %v498_v8, 7  ;;  %v491_v10 = vld [vmem:[%s1217_s5] sm:$0x3]  ;;  %s1098_s5 = smov 8  }
  0x51   : > { %931 = vmatprep.subr.bf16.mxu0 %v1093_v3  ;;  %927 = vmatprep.mubr.msk.bf16.mxu1 %vm1094_vm2, %v1093_v3  ;;  %vm492_vm4 = vnez %v491_v10  ;;  %v489_v12 = vld [vmem:[%s1206_s0] sm:$0x3] }
  0x52   : > { %v500_v11 = vsub.s32 0, %v499_v9  ;;  %v506_v13 = vsel %vm492_vm4, 16843009, %v1092_v2  ;;  %v620_v15 = vsub.s32 1, %v499_v9  ;;  %926 = vmatpush3.bf16.msra.mxu1 %v1096_v31  ;;  %v605_v8 = vld [vmem:[%s1227_s30] sm:$0xff] }
  0x53   : > { %922 = vmatmul.mubr.msk.bf16.vlgmr.msra.gmra.mrb[0].mxu0 %vm439_vm3, %v1002_v6  ;;  %1000 = vset.pattern.permute.xlu0 %v1095_v7  ;;  %v507_v16 = vunpack.c.0.s8 %v506_v13 }
  0x54   : > { %615 = vperm.xlu0 %1000, %v490_v1   ;;  %933 = vmatprep.mubr.msk.bf16.mxu0 %vm1094_vm2, %v1093_v3  ;;  %v501_v14 = vrot.slane %v489_v12, %v500_v11  ;;  %v621_v19 = vrot.slane %v489_v12, %v620_v15 }
  0x55   : > { %vm1243_vm6 = vcmp.ne.s32.totalorder %v507_v16, 0  ;;  %937 = vmatprep.subr.bf16.mxu1 %v1093_v3 }
  0x58   : > { %1001 = vset.pattern.permute.xlu0 %v1092_v2 }
  0xce   : > { %v496_v17 = vpop.permute.xlu0 %495 }
  0xcf   : > { %v502_v18 = vadd.f32 %v501_v14, %v496_v17 }
  0xd1   : > { %v504_v20 = vmul.f32 0.2, %v502_v18  ;;  %vm503_vm5 = vcmp.gt.f32.partialorder %v502_v18, 0.0 }
  0xd3   : > { %v616_v22 = vpop.permute.xlu0 %615  ;;  %v505_v23 = vsel %vm503_vm5, %v502_v18, %v504_v20 }
  0xd4   : > { %v622_v24 = vadd.f32 %v621_v19, %v616_v22  ;;  %v509_v25 = vsel %vm1243_vm6, %v505_v23, -1e+30 }
  0xd5   : > { %v511_v26 = vsel %vm510_vm7, %v509_v25, -inf }
  0xd6   : > { %v624_v27 = vmul.f32 0.2, %v622_v24  ;;  %512 = vmax.xlane.f32.xlu1 %v511_v26  ;;  %vm623_vm8 = vcmp.gt.f32.partialorder %v622_v24, 0.0 }
  0xd8   : > { %v625_v28 = vsel %vm623_vm8, %v622_v24, %v624_v27 }
  0xd9   : > { %v626_v29 = vsel %vm1243_vm6, %v625_v28, -1e+30 }
  0xda   : > { %v627_v30 = vsel %vm510_vm7, %v626_v29, -inf }
  0xdb   : > { %628 = vmax.xlane.f32.xlu1 %v627_v30 }
 0x126   : > { %v481_v32 = vpop.f32.mrb[0].mxu0 }
 0x127   : > { %v923_v33 = vpop.f32.mrb[1].mxu0 }
 0x128   : > { %v484_v34 = vpop.f32.mrb[2].mxu0 }
 0x129   : > { %v488_v35 = vpack.c.bf16 %v484_v34, %v481_v32  ;;  %v924_v36 = vpop.f32.mrb[3].mxu0 }
 0x12b   : > { %682 = vrot.lane.b32.xlu1 %v488_v35, %s1097_s4  ;;  %932 = vmatpush3.bf16.msra.mxu0 %v488_v35 }
 0x12c   : > { %943 = vmatprep.subr.bf16.mxu0 %v1093_v3 }
 0x163   : > { %v513_v37 = vpop.xlane.xlu1 %512 }
 0x164   : > { %v514_v38 = vsub.f32 %v509_v25, %v513_v37 }
 0x166   : > { %v515_v39 = vmul.f32 1.442695, %v514_v38 }
 0x168   : > { %1003 = vpow2.f32 %v515_v39  ;;  %v629_v40 = vpop.xlane.xlu1 %628 }
 0x169   : > { %v630_v41 = vsub.f32 %v626_v29, %v629_v40 }
 0x16b   : > { %v631_v42 = vmul.f32 1.442695, %v630_v41 }
 0x16d   : > { %1005 = vpow2.f32 %v631_v42 }
 0x172   : > { %v1004_v43 = vpop.eup %1003 }
 0x173   : > { %v517_v44 = vsel %vm1243_vm6, %v1004_v43, 0.0 }
 0x174   : > { %v518_v45 = vpack.c.bf16 %v517_v44, %v517_v44 }
 0x176   : > { %928 = vmatmul.mubr.msk.bf16.vlgmr.msra.gmra.mrb[0].mxu1 %vm510_vm7, %v518_v45  ;;  %934 = vmatmul.mubr.msk.bf16.vlgmr.msra.gmra.mrb[4].mxu0 %vm510_vm7, %v518_v45 }
 0x177   : > { %v1006_v46 = vpop.eup %1005  ;;  %938 = vmatpush3.bf16.msra.mxu1 %v1096_v31  ;;  %939 = vmatprep.mubr.msk.bf16.mxu1 %vm1094_vm2, %v1093_v3 }
 0x178   : > { %945 = vmatprep.mubr.msk.bf16.mxu0 %vm1094_vm2, %v1093_v3  ;;  %v633_v47 = vsel %vm1243_vm6, %v1006_v46, 0.0 }
 0x179   : > { %v634_v48 = vpack.c.bf16 %v633_v47, %v633_v47 }
 0x17e   : > { %940 = vmatmul.mubr.msk.bf16.vlgmr.msra.gmra.mrb[4].mxu1 %vm510_vm7, %v634_v48 }
 0x19d   : > { %v683_v49 = vpop.permute.xlu1 %682 }
 0x19e   : > { %944 = vmatpush3.bf16.msra.mxu0 %v683_v49 }
 0x1a1   : > { %946 = vmatmul.mubr.msk.bf16.vlgmr.msra.gmra.mrb[8].mxu0 %vm510_vm7, %v634_v48 }
 0x249   : > { %v556_v50 = vpop.f32.mrb[0].mxu1  ;;  %v599_v51 = vpop.f32.mrb[4].mxu0 }
 0x24a   : > { %v929_v52 = vpop.f32.mrb[1].mxu1  ;;  %v935_v53 = vpop.f32.mrb[5].mxu0  ;;  %vm562_vm10 = vcmp.gt.f32.partialorder %v556_v50, 0.0 }
 0x24b   : > { %v559_v54 = vpop.f32.mrb[2].mxu1  ;;  %v602_v55 = vpop.f32.mrb[6].mxu0 }
 0x24c   : > { %v930_v56 = vpop.f32.mrb[3].mxu1  ;;  %v936_v57 = vpop.f32.mrb[7].mxu0 }
 0x251   : > { %v672_v58 = vpop.f32.mrb[4].mxu1 }
 0x252   : > { %1007 = vrcp.f32 %v672_v58  ;;  %v941_v59 = vpop.f32.mrb[5].mxu1  ;;  %vm678_vm9 = vcmp.gt.f32.partialorder %v672_v58, 0.0 }
 0x253   : > { %v675_v60 = vpop.f32.mrb[6].mxu1  ;;  %1009 = vrcp.f32 %v556_v50 }
 0x254   : > { %v942_v61 = vpop.f32.mrb[7].mxu1 }
 0x25c   : > { %v1008_v62 = vpop.eup %1007 }
 0x25d   : > { %v680_v63 = vsel %vm678_vm9, %v1008_v62, 0.0  ;;  %v1010_v0 = vpop.eup %1009 }
 0x25e   : > { %728 = vperm.xlu0 %1001, %v680_v63   ;;  %v564_v1 = vsel %vm562_vm10, %v1010_v0, 0.0 }
 0x262   : > { %608 = vperm.xlu0 %1001, %v564_v1  }
 0x274   : > { %v719_v2 = vpop.f32.mrb[8].mxu0 }
 0x275   : > { %v947_v3 = vpop.f32.mrb[9].mxu0 }
 0x276   : > { %v722_v4 = vpop.f32.mrb[10].mxu0 }
 0x277   : > { %v948_v5 = vpop.f32.mrb[11].mxu0 }
 0x2dd   : > { %v729_v6 = vpop.permute.xlu0 %728 }
 0x2de   : > { %v731_v7 = vmul.f32 %v729_v6, %v719_v2 }
 0x2e0   : > { %733 = vrot.lane.b32.xlu0 %v731_v7, %s1098_s5 }
 0x2e1   : > { %v609_v9 = vpop.permute.xlu0 %608 }
 0x2e2   : > { %v611_v10 = vmul.f32 %v609_v9, %v599_v51 }
 0x2e4   : > { %v612_v11 = vadd.f32 %v611_v10, %v605_v8 }
 0x2e6   : > { %613 = vst.msk [vmem:[%s1227_s30] sm:$0xff] %vm439_vm3, %v612_v11 }
 0x2ed   : > { %v725_v12 = vld [vmem:[%s1227_s30] sm:$0xff] }
 0x352   : > { %v734_v13 = vpop.permute.xlu0 %733 }
 0x353   : > { %v736_v14 = vadd.f32 %v734_v13, %v725_v12 }
 0x355   : > { %738 = vst.msk [vmem:[%s1227_s30] sm:$0xff] %vm737_vm11, %v736_v14 }
 0x356 PF: > { %s33_s25 = sadd.s32 1, %s1087_s25   ;;  %s1309_s22 = sld [smem:[#allocation7_spill]] }
 0x357   : > { %p30_p11 = scmp.ge.s32.totalorder %s33_s25, 14   ;;  %s1310_s23 = sld [smem:[#allocation8_spill]] }
 0x358   : > { %s1311_s24 = sld [smem:[#allocation9_spill]]  ;;  %s1312_s2 = sld [smem:[#allocation10_spill]] }
 0x359   :  { %32 = sbr.rel (!%p30_p11) target bundleno = 39 (0x27), region = 93 }

</bundles_post_ra>
